<compile_context>
chip_gen: v7x
topology: tpu7x:2x2x1
jax: 0.10.0
libtpu: 0.0.40
codegen_flags: <defaults>
</compile_context>

<pallas_src>
import numpy as np
import jax
import jax.numpy as jnp
from jax.experimental import pallas as pl
from jax.experimental.pallas import tpu as pltpu


def _round_up(n, m):
    return ((n + m - 1) // m) * m


# ----------------------------- Pallas kernel --------------------------------
def dlinear_kernel(w_ref, b_ref, x_ref, o_ref):
    # w_ref: (P, L)   folded weight, VMEM-resident across all grid steps
    # b_ref: (P, 1)   folded bias (fp32), VMEM-resident, broadcast over lanes
    # x_ref: (L, TN)  lane-dense tile of the (L, BC_pad) input slab
    # o_ref: (P, TN)  lane-dense output tile
    acc = jnp.dot(w_ref[...], x_ref[...], preferred_element_type=jnp.float32)
    o_ref[...] = (acc + b_ref[...]).astype(o_ref.dtype)


def fold_params(A, Ws, bs, Wt, bt):
    """One-time parameter fold: DLinear-'B' forward == W_eff @ x + b_eff."""
    W_eff = Ws + jnp.dot(Wt - Ws, A)          # (P, L)
    b_eff = (bs + bt).reshape(-1, 1)          # (P, 1)
    return W_eff, b_eff


def dlinear_forward(x, x_mark, W_eff, b_eff, pred_len, *,
                    block_n=512, compute_dtype=jnp.bfloat16):
    """x: (B, L, C) -> (B, P, C).  x_mark is unused for version 'B'."""
    del x_mark
    B, L, C = x.shape
    P = pred_len
    BC = B * C

    # Lane tile: multiple of 128, capped by the (padded) problem width.
    tn = max(128, _round_up(min(block_n, _round_up(BC, 128)), 128))
    bc_pad = _round_up(BC, tn)                 # grid divides evenly, lane-dense

    # (B, L, C) -> (L, B*C) slab so the matmul N-dim is the lane dim.
    # TODO(synk): for channel counts C >= 128 one could instead grid over B
    # with (L, C)/(P, C) blocks and drop these two layout passes entirely.
    x_slab = jnp.transpose(x, (1, 0, 2)).reshape(L, BC)
    if bc_pad != BC:
        x_slab = jnp.pad(x_slab, ((0, 0), (0, bc_pad - BC)))

    w = W_eff.astype(compute_dtype)
    xs = x_slab.astype(compute_dtype)
    b = b_eff.astype(jnp.float32).reshape(P, 1)

    grid = (pl.cdiv(bc_pad, tn),)

    out_slab = pl.pallas_call(
        dlinear_kernel,
        out_shape=jax.ShapeDtypeStruct((P, bc_pad), x.dtype),
        grid_spec=pltpu.PrefetchScalarGridSpec(
            num_scalar_prefetch=0,
            grid=grid,
            in_specs=[
                pl.BlockSpec((P, L), lambda i: (0, 0)),    # W_eff (resident)
                pl.BlockSpec((P, 1), lambda i: (0, 0)),    # b_eff (resident)
                pl.BlockSpec((L, tn), lambda i: (0, i)),   # x tile (pipelined)
            ],
            out_specs=pl.BlockSpec((P, tn), lambda i: (0, i)),
        ),
        compiler_params=pltpu.CompilerParams(
            dimension_semantics=("parallel",)),   # shards across TCs on v7x
    )(w, b, xs)

    # Drop padded lanes, restore (B, P, C).
    out_slab = out_slab[:, :BC]
    return jnp.transpose(out_slab.reshape(P, B, C), (1, 0, 2))


# ------------------------- parameter / matrix setup --------------------------
def build_moving_avg_matrix(L, kernel_size=25):
    """(L, L) matrix M such that M @ x == moving_avg(x) with replicate padding
    of (kernel_size-1)//2 on each end and stride 1 (AvgPool1d, padding=0)."""
    pad = (kernel_size - 1) // 2
    A = np.zeros((L, L), dtype=np.float32)
    for t in range(L):
        for k in range(kernel_size):
            j = min(max(t + k - pad, 0), L - 1)
            A[t, j] += 1.0 / kernel_size
    return jnp.asarray(A)


def init_linear(key, out_features, in_features):
    """Deterministic init mimicking torch.nn.Linear default (uniform +/- 1/sqrt(in))."""
    kw, kb = jax.random.split(key)
    bound = 1.0 / np.sqrt(in_features)
    W = jax.random.uniform(kw, (out_features, in_features),
                           minval=-bound, maxval=bound, dtype=jnp.float32)
    b = jax.random.uniform(kb, (out_features,),
                           minval=-bound, maxval=bound, dtype=jnp.float32)
    return W, b


# ------------------------------- reference -----------------------------------
def dlinear_reference(x, A, Ws, bs, Wt, bt):
    # Pure-JAX reference of the ORIGINAL (un-folded) math for correctness check.
    trend = jnp.einsum('lk,bkc->blc', A, x)
    seasonal = x - trend
    s_out = jnp.einsum('pl,blc->bpc', Ws, seasonal) + bs[None, :, None]
    t_out = jnp.einsum('pl,blc->bpc', Wt, trend) + bt[None, :, None]
    return s_out + t_out


# --------------------------------- main ---------------------------------------
if __name__ == "__main__":
    # Small but non-trivial shapes: B*C = 300 -> padded to 384 lanes; with a
    # 128-wide lane tile this exercises a real 3-step, pipelined, parallel grid.
    B, L, P, C = 3, 96, 24, 100        # batch, seq_len, pred_len, enc_in
    kernel_size = 25

    key = jax.random.PRNGKey(0)
    kx, km, ks, kt = jax.random.split(key, 4)

    x = jax.random.normal(kx, (B, L, C), dtype=jnp.float32)
    x_mark = jax.random.normal(km, (B, L, 4), dtype=jnp.float32)  # unused ('B')

    A = build_moving_avg_matrix(L, kernel_size)
    Ws, bs = init_linear(ks, P, L)
    Wt, bt = init_linear(kt, P, L)

    # One-time algebraic fold of decomposition + both Linear layers.
    W_eff, b_eff = fold_params(A, Ws, bs, Wt, bt)

    ref = dlinear_reference(x, A, Ws, bs, Wt, bt)

    # fp32 MXU path: exact vs reference.
    out_f32 = dlinear_forward(x, x_mark, W_eff, b_eff, pred_len=P,
                              block_n=128, compute_dtype=jnp.float32)
    out_f32 = jax.block_until_ready(out_f32)
    assert out_f32.shape == (B, P, C)
    np.testing.assert_allclose(np.asarray(out_f32), np.asarray(ref),
                               rtol=1e-5, atol=1e-5)

    # bf16-fed MXU path (the v6e/v7x production default), fp32 accumulation.
    out_bf16 = dlinear_forward(x, x_mark, W_eff, b_eff, pred_len=P,
                               block_n=128, compute_dtype=jnp.bfloat16)
    out_bf16 = jax.block_until_ready(out_bf16)
    assert out_bf16.shape == (B, P, C)
    np.testing.assert_allclose(np.asarray(out_bf16), np.asarray(ref),
                               rtol=5e-2, atol=5e-2)

    print("KERNEL_OK")
</pallas_src>

<mosaic_0001>
module attributes {stable_mosaic.version = 11 : i64} {
  func.func @dlinear_kernel(%arg0: i32, %arg1: memref<24x96xf32, #tpu.memory_space<vmem>>, %arg2: memref<24x1xf32, #tpu.memory_space<vmem>>, %arg3: memref<96x128xf32, #tpu.memory_space<vmem>>, %arg4: memref<24x128xf32, #tpu.memory_space<vmem>>) attributes {dimension_semantics = [#tpu.dimension_semantics<parallel>], iteration_bounds = array<i64: 3>, scalar_prefetch = 0 : i64, scratch_operands = 0 : i64, tpu.core_type = #tpu.core_type<tc>, window_params = [{pipeline_mode = #tpu.pipeline_mode<synchronous>, transform_indices = @transform_0, window_bounds = array<i64: 24, 96>}, {pipeline_mode = #tpu.pipeline_mode<synchronous>, transform_indices = @transform_1, window_bounds = array<i64: 24, 1>}, {transform_indices = @transform_2, window_bounds = array<i64: 96, 128>}, {transform_indices = @transform_3, window_bounds = array<i64: 24, 128>}]} {
    %c0 = arith.constant 0 : index
    %c0_0 = arith.constant 0 : index
    %0 = vector.load %arg1[%c0, %c0_0] : memref<24x96xf32, #tpu.memory_space<vmem>>, vector<24x96xf32>
    %c0_1 = arith.constant 0 : index
    %c0_2 = arith.constant 0 : index
    %1 = vector.load %arg3[%c0_1, %c0_2] : memref<96x128xf32, #tpu.memory_space<vmem>>, vector<96x128xf32>
    %cst = arith.constant dense<0.000000e+00> : vector<24x128xf32>
    %2 = tpu.matmul %0, %1, %cst {dimension_numbers = #tpu.dot_dimension_numbers<[1], [0], [0], [1], [0, 0, 1, 1], [], []>} : vector<24x96xf32>, vector<96x128xf32>, vector<24x128xf32> -> vector<24x128xf32>
    %c0_3 = arith.constant 0 : index
    %c0_4 = arith.constant 0 : index
    %3 = vector.load %arg2[%c0_3, %c0_4] : memref<24x1xf32, #tpu.memory_space<vmem>>, vector<24x1xf32>
    %4 = vector.broadcast %3 : vector<24x1xf32> to vector<24x128xf32>
    %5 = arith.addf %2, %4 : vector<24x128xf32>
    %c0_5 = arith.constant 0 : index
    %c0_6 = arith.constant 0 : index
    %6 = vector.load %arg4[%c0_5, %c0_6] : memref<24x128xf32, #tpu.memory_space<vmem>>, vector<24x128xf32>
    tpu.vector_store %arg4[%c0_5, %c0_6], %5 {strides = array<i32>} : memref<24x128xf32, #tpu.memory_space<vmem>>, vector<24x128xf32>,
    return
  }
  func.func @transform_0(%arg0: i32) -> (i32, i32) {
    %c0_i32 = arith.constant 0 : i32
    %c0_i32_0 = arith.constant 0 : i32
    %c0_i32_1 = arith.constant 0 : i32
    return %c0_i32, %c0_i32_0 : i32, i32
  }
  func.func @transform_1(%arg0: i32) -> (i32, i32) {
    %c0_i32 = arith.constant 0 : i32
    %c0_i32_0 = arith.constant 0 : i32
    %c0_i32_1 = arith.constant 0 : i32
    return %c0_i32, %c0_i32_0 : i32, i32
  }
  func.func @transform_2(%arg0: i32) -> (i32, i32) {
    %c0_i32 = arith.constant 0 : i32
    %c0_i32_0 = arith.constant 0 : i32
    return %c0_i32, %arg0 : i32, i32
  }
  func.func @transform_3(%arg0: i32) -> (i32, i32) {
    %c0_i32 = arith.constant 0 : i32
    %c0_i32_0 = arith.constant 0 : i32
    return %c0_i32, %arg0 : i32, i32
  }
}

</mosaic_0001>

<bundles_post_ra>
// kernel: tpu_custom_call.1
= control target key start
LH: loop header
LB: loop body
LE: loop exit
PB: predicated region body
PF: predicated region fallthrough
CT: control target
= control target key end

     0   :  { %8 = vsyncpa [#allocation3], 0  ;;  %s872_s0 = inlined_call_operand.vmem [shape: f32[24,96], index: 0, kind: input, shape index: {}]   ;;  %s873_s1 = inlined_call_operand.vmem [shape: f32[24,1], index: 1, kind: input, shape index: {}]   ;;  %s874_s2 = inlined_call_operand.hbm [shape: f32[96,384], index: 2, kind: input, shape index: {}]   ;;  %s875_s3 = inlined_call_operand.hbm [shape: f32[24,384], index: 3, kind: output, shape index: {}]  }
   0x1   :  { %10 = vsyncpa [#allocation3 + $0x1], 0 }
   0x2   :  { %11 = vsyncpa [#allocation4], 0 }
   0x3   :  { %13 = vsyncpa [#allocation4 + $0x1], 0  ;;  %s680_s12 = smov 0   ;;  %s682_s13 = smov 0  }
   0x4   :  { %s684_s14 = smov 0   ;;  %s686_s15 = smov 0  }
   0x5 LB: > { %s701_s16 = sadd.s32 4294967295, %s646_s15   ;;  %s400_s17 = sadd.s32 4294967294, %s646_s15   ;;  %s646_s15 = sphi %s686_s15, %s887_s15   ;;  %s642_s14 = sphi %s684_s14, %s886_s14   ;;  %s638_s13 = sphi %s682_s13, %s885_s13   ;;  %s634_s12 = sphi %s680_s12, %s884_s12  }
   0x6   : > { %s705_s18 = sadd.s32 1, %s646_s15   ;;  %s68_s19 = sadd.s32 1, %s642_s14 }
   0x7   : > { %s65_s20 = ssub.s32 %s646_s15, %s705_s18  ;;  %p75_p0 = scmp.ne.s32.totalorder %s642_s14, %s638_s13 }
   0x8   : > { %p66_p1 = scmp.eq.s32.totalorder %s65_s20, 0  ;;  %p76_p2 = scmp.eq.s32.totalorder %s646_s15, 0 }
   0x9   : > { %p81_p3 = scmp.ne.s32.totalorder %s638_s13, %s634_s12  ;;  %p82_p4 = scmp.eq.s32.totalorder %s701_s16, 0 }
   0xa   : > { %s717_s21 = scalar_select %p66_p1, %s642_s14, %s68_s19  }
   0xb   : > { %p77_p5 = por %p76_p2, %p75_p0  ;;  %p719_p6 = por %p82_p4, %p81_p3 }
   0xc   : > { %p105_p7 = scmp.eq.s32.totalorder %s701_s16, 2  ;;  %p111_p8 = scmp.eq.s32.totalorder %s400_s17, 2 }
   0xd   : > { %p504_p9 = scmp.lt.s32.totalorder %s646_s15, 3  ;;  %s137_s25 = sand.u32 1, %s642_s14  }
   0xe   : > { %p725_p10 = por %p105_p7, %p75_p0  ;;  %p729_p11 = por %p111_p8, %p81_p3 }
   0xf   : > { %s403_s26 = sshll.u32 %s646_s15, 7  ;;  %s489_s27 = smul.u32 96, %s137_s25 }
  0x10   : > { %s878_s23 = scalar_select %p725_p10, 1, 0 }
  0x11   : > { %s879_s24 = scalar_select %p729_p11, 1, 0 }
  0x12   : > { %s738_s30 = scalar_lea.hbm %s874_s2, %s403_s26  ;;  %p740_p12 = pnand %p504_p9, %p77_p5 }
  0x13   : > { %s141_s5 = scalar_lea.vmem [#allocation2], %s489_s27  ;;  %s747_s7 = scalar_lea.sflag [#allocation3], %s137_s25 }
  0x14   : > { %s147_s6 = sshll.u32 %s141_s5, 4  ;;  %s550_s8 = scalar_lea.hbm %s738_s30, 1536  ;;  %s744_s6 = int_to_ptr.vmem [resolvable:$true] %s147_s6 }
  0x15   : > { %p551_p0 = scmp.ne.s32.totalorder %s738_s30, %s550_s8  ;;  %p552_p1 = pneg %p740_p12 }
  0x16   : > { %s555_s11 = scalar_lea.hbm %s874_s2, 4608  ;;  %p556_p4 = scmp.lt.u32.totalorder %s738_s30, %s874_s2 }
  0x17   : > { %p553_p2 = pnand %p552_p1, %p551_p0  ;;  %p557_p5 = scmp.lt.u32.totalorder %s555_s11, %s550_s8 }
  0x18   : > { %p559_p8 = scmp.lt.u32.totalorder %s550_s8, %s738_s30 }
  0x19   : > { %p554_p3 = pneg %p553_p2  ;;  %p558_p7 = por %p557_p5, %p556_p4 }
  0x1b   : > { %p560_p9 = por %p559_p8, %p558_p7 }
  0x1d   : > { %p561_p13 = pnand %p560_p9, %p554_p3 }
  0x1f   : > { %564 = shalt.err (!%p561_p13)
}
  0x20   : > { %s565_s20 = scalar_lea.vmem %s744_s6, 1536  ;;  %s648_s25 = smov [#allocation2]  }
  0x21   : > { %p566_p0 = scmp.ne.s32.totalorder %s744_s6, %s565_s20  ;;  %s570_s26 = sshll.u32 %s648_s25, 4  ;;  %s571_s26 = int_to_ptr.vmem [resolvable:$false] %s570_s26 }
  0x22   : > { %s572_s27 = scalar_lea.vmem %s571_s26, 3072  ;;  %p573_p10 = scmp.lt.s32.totalorder %s744_s6, %s571_s26 }
  0x23   : > { %p568_p2 = pnand %p566_p0, %p552_p1  ;;  %p574_p4 = scmp.lt.s32.totalorder %s572_s27, %s565_s20 }
  0x25   : > { %p569_p11 = pneg %p568_p2  ;;  %p575_p5 = por %p574_p4, %p573_p10 }
  0x27   : > { %p576_p7 = pnand %p575_p5, %p569_p11 }
  0x29   : > { %579 = shalt.err (!%p576_p7)
}
  0x2a   : > { %s649_s28 = smov 384   ;;  %s650_s29 = smov 128  }
  0x2b   : > { %s651_s5 = smov 8   ;;  %p155_p13 = scmp.lt.s32.totalorder %s646_s15, 4 }
  0x2c   : > { %499 = dma.hbm_to_vmem [thread:$0]  (!%p740_p12), %s738_s30, 1536, %s744_s6, %s747_s7, %s649_s28, %s650_s29, %s651_s5  }
  0x2d   : > { %p881_p1 = scmp.ge.s32.totalorder %s646_s15, 1 }
  0x2f   : > { %p156_p3 = pnand %p881_p1, %p155_p13 }
  0x30   : > { %s779_s8 = sand.u32 (!%p156_p3), 1, %s638_s13  }
  0x31   : > { %159 = sbr.rel (%p156_p3) target bundleno = 318 (0x13e), region = 32  ;;  %s162_s10 = scalar_lea.sflag (!%p156_p3), [#allocation3], %s779_s8 }
  0x32   : > { %s490_s9 = smul.u32 (!%p156_p3), 96, %s779_s8 }
  0x34   : > { %s783_s11 = scalar_lea.vmem (!%p156_p3), [#allocation2], %s490_s9 }
  0x38   : > { %625 = dma.done.wait (%p719_p6), %s162_s10, 1536  }
  0x39   : > { %627 = vsyncadd (%p719_p6), %s162_s10, 4294965760  ;;  %v652_v0 = vmov 0.0|0.0   ;;  %vm653_vm0 = vmmov 0   ;;  %v654_v1 = vmov 0.0   ;;  %v655_v2 = vmov 0   ;;  %v191_v3 = vld [vmem:[%s783_s11] sm:$0xff] }
  0x3a   : > { %459 = vmatprep.subr.bf16.mxu0 %v652_v0  ;;  %477 = vmatprep.subr.bf16.mxu1 %v652_v0  ;;  %v192_v4 = vld [vmem:[%s783_s11 + $0x8] sm:$0xff]  ;;  %v193_v5 = vld [vmem:[%s783_s11 + $0x10] sm:$0xff]  ;;  %v194_v7 = vld [vmem:[%s783_s11 + $0x18] sm:$0xff]  ;;  %vm221_vm1 = vcmask 785408   ;;  %s491_s29 = smul.u32 24, %s779_s8  ;;  %s408_s10 = sshll.u32 %s701_s16, 7 }
  0x3b   : > { %450 = vmatprep.mubr.msk.f32.mxu0 %vm653_vm0, %v654_v1  ;;  %453 = vmatprep.mubr.msk.f32.mxu1 %vm653_vm0, %v654_v1  ;;  %v460_v6 = vpack.c.bf16 %v192_v4, %v191_v3  ;;  %v463_v8 = vpack.c.bf16 %v194_v7, %v193_v5  ;;  %v195_v9 = vld [vmem:[%s783_s11 + $0x20] sm:$0xff]  ;;  %v196_v10 = vld [vmem:[%s783_s11 + $0x28] sm:$0xff]  ;;  %v205_v12 = vld [vmem:[%s873_s1 + $0x10] sm:$0xff]  ;;  %s829_s30 = scalar_lea.hbm %s875_s3, %s408_s10  ;;  %s315_s4 = scalar_lea.sflag [#allocation4], %s779_s8 }
  0x3c   : > { %548 = vset.pattern.permute.xlu0 %v655_v2  ;;  %549 = vset.pattern.permute.xlu1 %v655_v2  ;;  %v203_v11 = vld [vmem:[%s873_s1] sm:$0xff]  ;;  %v466_v13 = vpack.c.bf16 %v196_v10, %v195_v9  ;;  %v204_v14 = vld [vmem:[%s873_s1 + $0x8] sm:$0xff]  ;;  %v197_v15 = vld [vmem:[%s783_s11 + $0x30] sm:$0xff]  ;;  %s187_s5 = scalar_lea.vmem [#allocation5], %s491_s29  ;;  %p882_p10 = scmp.ne.s32.totalorder %s878_s23, 0 }
  0x3d   : > { %461 = vmatpush3.bf16.msra.mxu0 %v460_v6  ;;  %483 = vmatpush3.bf16.msra.mxu1 %v460_v6  ;;  %v198_v16 = vld [vmem:[%s783_s11 + $0x38] sm:$0xff]  ;;  %v199_v18 = vld [vmem:[%s783_s11 + $0x40] sm:$0xff]  ;;  %v200_v19 = vld [vmem:[%s783_s11 + $0x48] sm:$0xff]  ;;  %s327_s9 = sshll.u32 %s187_s5, 4  ;;  %s656_s16 = smov [#allocation5]   ;;  %s824_s9 = int_to_ptr.vmem [resolvable:$true] %s327_s9 }
  0x3e   : > { %462 = vmatprep.subr.bf16.mxu0 %v652_v0  ;;  %478 = vmatprep.subr.bf16.mxu1 %v652_v0  ;;  %v469_v17 = vpack.c.bf16 %v198_v16, %v197_v15  ;;  %v472_v20 = vpack.c.bf16 %v200_v19, %v199_v18  ;;  %v201_v21 = vld [vmem:[%s783_s11 + $0x50] sm:$0xff]  ;;  %v202_v22 = vld [vmem:[%s783_s11 + $0x58] sm:$0xff]  ;;  %v188_v24 = vld [vmem:[%s872_s0] sm:$0xff]  ;;  %s580_s6 = scalar_lea.vmem %s824_s9, 384  ;;  %s584_s7 = sshll.u32 %s656_s16, 4  ;;  %s585_s7 = int_to_ptr.vmem [resolvable:$false] %s584_s7 }
  0x3f   : > { %208 = vperm.xlu0 %548, %v203_v11   ;;  %218 = vperm.xlu1 %549, %v205_v12   ;;  %v475_v23 = vpack.c.bf16 %v202_v22, %v201_v21  ;;  %v189_v25 = vld [vmem:[%s872_s0 + $0x8] sm:$0xff]  ;;  %v190_v26 = vld [vmem:[%s872_s0 + $0x10] sm:$0xff]  ;;  %p581_p6 = scmp.ne.s32.totalorder %s824_s9, %s580_s6  ;;  %s586_s17 = scalar_lea.vmem %s585_s7, 768 }
  0x40   : > { %p587_p8 = scmp.lt.s32.totalorder %s824_s9, %s585_s7  ;;  %p588_p9 = scmp.lt.s32.totalorder %s586_s17, %s580_s6 }
  0x41   : > { %464 = vmatpush3.bf16.msra.mxu0 %v463_v8  ;;  %484 = vmatpush3.bf16.msra.mxu1 %v463_v8  ;;  %p582_p11 = pnand %p581_p6, %p882_p10 }
  0x42   : > { %465 = vmatprep.subr.bf16.mxu0 %v652_v0  ;;  %479 = vmatprep.subr.bf16.mxu1 %v652_v0  ;;  %p589_p0 = por %p588_p9, %p587_p8 }
  0x43   : > { %213 = vperm.xlu0 %548, %v204_v14   ;;  %p583_p12 = pneg %p582_p11 }
  0x45   : > { %467 = vmatpush3.bf16.msra.mxu0 %v466_v13  ;;  %485 = vmatpush3.bf16.msra.mxu1 %v466_v13  ;;  %p590_p2 = pnand %p589_p0, %p583_p12 }
  0x46   : > { %468 = vmatprep.subr.bf16.mxu0 %v652_v0  ;;  %480 = vmatprep.subr.bf16.mxu1 %v652_v0 }
  0x49   : > { %470 = vmatpush3.bf16.msra.mxu0 %v469_v17  ;;  %486 = vmatpush3.bf16.msra.mxu1 %v469_v17 }
  0x4a   : > { %471 = vmatprep.subr.bf16.mxu0 %v652_v0  ;;  %481 = vmatprep.subr.bf16.mxu1 %v652_v0 }
  0x4d   : > { %473 = vmatpush3.bf16.msra.mxu0 %v472_v20  ;;  %487 = vmatpush3.bf16.msra.mxu1 %v472_v20 }
  0x4e   : > { %474 = vmatprep.subr.bf16.mxu0 %v652_v0  ;;  %482 = vmatprep.subr.bf16.mxu1 %v652_v0 }
  0x51   : > { %476 = vmatpush3.bf16.msra.mxu0 %v475_v23  ;;  %488 = vmatpush3.bf16.msra.mxu1 %v475_v23 }
  0x54   : > { %451 = vmatmul.mubr.msk.f32.vlgmr.msra.gmra.mrb[0].mxu0 %vm221_vm1, %v188_v24  ;;  %454 = vmatmul.mubr.msk.f32.vlgmr.msra.gmra.mrb[0].mxu1 %vm221_vm1, %v189_v25 }
  0x55   : > { %456 = vmatprep.mubr.msk.f32.mxu1 %vm653_vm0, %v654_v1 }
  0x58   : > { %457 = vmatmul.mubr.msk.f32.gmra.mrb[2].mxu1 %vm221_vm1, %v190_v26 }
  0xbe   : > { %v209_v27 = vpop.permute.xlu0 %208  ;;  %v219_v35 = vpop.permute.xlu1 %218 }
  0xc2   : > { %v214_v28 = vpop.permute.xlu0 %213 }
 0x127   : > { %v297_v29 = vpop.f32.mrb[0].mxu0  ;;  %v302_v30 = vpop.f32.mrb[0].mxu1 }
 0x128   : > { %v298_v31 = vadd.f32 %v297_v29, %v209_v27  ;;  %v303_v32 = vadd.f32 %v302_v30, %v214_v28  ;;  %v455_v33 = vpop.f32.mrb[1].mxu1  ;;  %v452_v34 = vpop.f32.mrb[1].mxu0 }
 0x12a   : > { %311 = vst [vmem:[%s187_s5] sm:$0xff] %v298_v31  ;;  %312 = vst [vmem:[%s187_s5 + $0x8] sm:$0xff] %v303_v32 }
 0x12b   : > { %v307_v36 = vpop.f32.mrb[2].mxu1 }
 0x12c   : > { %v308_v37 = vadd.f32 %v307_v36, %v219_v35  ;;  %v458_v38 = vpop.f32.mrb[3].mxu1 }
 0x12e   : > { %313 = vst [vmem:[%s187_s5 + $0x10] sm:$0xff] %v308_v37 }
 0x12f   : > { %593 = shalt.err (!%p590_p2)
}
 0x130   : > { %s594_s19 = scalar_lea.hbm %s829_s30, 384  ;;  %s598_s26 = scalar_lea.hbm %s875_s3, 1152 }
 0x131   : > { %p595_p4 = scmp.ne.s32.totalorder %s829_s30, %s594_s19  ;;  %p599_p13 = scmp.lt.u32.totalorder %s829_s30, %s875_s3 }
 0x132   : > { %p600_p1 = scmp.lt.u32.totalorder %s598_s26, %s594_s19  ;;  %p602_p6 = scmp.lt.u32.totalorder %s594_s19, %s829_s30 }
 0x133   : > { %p596_p5 = pnand %p595_p4, %p882_p10 }
 0x134   : > { %p601_p3 = por %p600_p1, %p599_p13 }
 0x135   : > { %p597_p7 = pneg %p596_p5 }
 0x136   : > { %p603_p11 = por %p602_p6, %p601_p3 }
 0x138   : > { %p604_p12 = pnand %p603_p11, %p597_p7 }
 0x13a   : > { %607 = shalt.err (!%p604_p12)
}
 0x13b   : > { %s657_s29 = smov 128   ;;  %s658_s5 = smov 384  }
 0x13c   : > { %s659_s10 = smov 8  }
 0x13d   : > { %494 = dma.vmem_to_hbm [thread:$0]  (%p882_p10), %s824_s9, 384, %s829_s30, %s315_s4, %s657_s29, %s658_s5, %s659_s10  }
 0x13e PF: > { %p505_p8 = scmp.ge.s32.totalorder %s646_s15, 2  ;;  %s342_s11 = sand.u32 1, %s634_s12  }
 0x13f   : > { %p883_p9 = scmp.ne.s32.totalorder %s879_s24, 0  ;;  %s343_s22 = scalar_lea.sflag [#allocation4], %s342_s11 }
 0x141   : > { %p501_p0 = pnand %p505_p8, %p883_p9 }
 0x143   : > { %629 = dma.done.wait (!%p501_p0), %s343_s22, 384  }
 0x144   : > { %631 = vsyncadd (!%p501_p0), %s343_s22, 4294966912  ;;  %p16_p2 = scmp.ge.s32.totalorder %s705_s18, 5   ;;  %s884_s12 = smov %s638_s13 }
 0x145   : > { %s885_s13 = smov %s642_s14  ;;  %s886_s14 = smov %s717_s21 }
 0x146   : > { %s887_s15 = smov %s705_s18  ;;  %18 = sbr.rel (!%p16_p2) target bundleno = 5 (0x5), region = 77 }
 0x14d   :  { %348 = vsyncpa [#allocation3], 1 }
 0x14e   :  { %350 = vsyncpa [#allocation3 + $0x1], 1 }
 0x14f   :  { %351 = vsyncpa [#allocation4], 1 }
 0x150   :  { %353 = vsyncpa [#allocation4 + $0x1], 1 }

</bundles_post_ra>
